<compile_context>
chip_gen: v7x
topology: tpu7x:2x2x1
jax: 0.10.0
libtpu: 0.0.40
codegen_flags: <defaults>
</compile_context>

<pallas_src>
import math
from functools import partial

import jax
import jax.numpy as jnp
from jax.experimental import pallas as pl
from jax.experimental.pallas import tpu as pltpu


# ----------------------------- kernel ---------------------------------------


def _layer_norm(x, w, b, eps=1e-5):
    mu = jnp.mean(x, axis=-1, keepdims=True)
    var = jnp.mean((x - mu) ** 2, axis=-1, keepdims=True)
    return (x - mu) * jax.lax.rsqrt(var + eps) * w + b


def transformer_kernel(
    src_ref,      # (TB, S, I)   bf16
    pe_ref,       # (TB, 1, D)   f32   positional-encoding row per batch element
    emb_wT_ref,   # (I, D)       bf16
    emb_b_ref,    # (1, D)       f32
    wattn_ref,    # (1, 4, D, D) bf16  [wqT*scale, wkT, wvT, woT] (lane dim = D)
    l1_wT_ref,    # (1, D, F)    bf16
    l2_wT_ref,    # (1, F, D)    bf16
    vecD_ref,     # (1, 9, D)    f32   [bq*scale, bk, bv, out_b, l2_b, n1_w, n1_b, n2_w, n2_b]
    vecF_ref,     # (1, 1, F)    f32   l1_b
    fc_wT_ref,    # (D, O_pad)   bf16
    fc_b_ref,     # (1, O_pad)   f32
    o_ref,        # (1, TB, O_pad) f32
    x_scr,        # VMEM (TB*S, D) f32 — activation carry across the layer axis
    head_scr,     # VMEM (TB*S, D) f32 — concatenated per-head attention outputs
    *,
    num_heads,
):
    l = pl.program_id(1)
    num_l = pl.num_programs(1)
    TB, S, I = src_ref.shape
    D = emb_wT_ref.shape[1]
    H = num_heads
    hd = D // H
    N = TB * S
    bf16 = jnp.bfloat16

    # ---- first layer step: embedding + positional encoding -> scratch ----
    @pl.when(l == 0)
    def _():
        src = src_ref[...].reshape(N, I)                        # bf16 already
        x0 = jnp.dot(src, emb_wT_ref[...],
                     preferred_element_type=jnp.float32) + emb_b_ref[...]
        # PE quirk of the reference module: PE row of the *batch index* is
        # broadcast over the whole sequence.
        x0 = x0.reshape(TB, S, D) + pe_ref[...]
        x_scr[...] = x0.reshape(N, D)

    # ---- per-layer packed small vectors (one DMA) ----
    vd = vecD_ref[0]                                            # (9, D) f32
    bq, bk, bv = vd[0:1], vd[1:2], vd[2:3]
    out_b, l2_b = vd[3:4], vd[4:5]
    n1_w, n1_b, n2_w, n2_b = vd[5:6], vd[6:7], vd[7:8], vd[8:9]
    l1_b = vecF_ref[0]                                          # (1, F)

    wq = wattn_ref[0, 0]
    wk = wattn_ref[0, 1]
    wv = wattn_ref[0, 2]
    wo = wattn_ref[0, 3]

    x = x_scr[...]                                              # (N, D) f32
    xb = x.astype(bf16)

    # ---- multi-head self-attention (post-LN) ----
    # Full-width (N,D)x(D,D) projections fill the MXU; scale is folded into
    # wq / bq in prepare_params.
    q = jnp.dot(xb, wq, preferred_element_type=jnp.float32) + bq
    k = jnp.dot(xb, wk, preferred_element_type=jnp.float32) + bk
    v = jnp.dot(xb, wv, preferred_element_type=jnp.float32) + bv
    q3 = q.reshape(TB, S, D).astype(bf16)
    k3 = k.reshape(TB, S, D).astype(bf16)
    v3 = v.reshape(TB, S, D).astype(bf16)

    # Per-head SxS score / AV einsums (inherently per-head); statically
    # unrolled, operating on static lane slices.  Head outputs are written
    # into a lane-contiguous scratch so the merge is ONE (N,D)x(D,D) matmul.
    for h in range(H):
        lo = h * hd
        qh = q3[:, :, lo:lo + hd]
        kh = k3[:, :, lo:lo + hd]
        vh = v3[:, :, lo:lo + hd]
        s = jnp.einsum("bqd,bkd->bqk", qh, kh,
                       preferred_element_type=jnp.float32)      # (TB, S, S)
        s = s - jnp.max(s, axis=-1, keepdims=True)
        p = jnp.exp(s)
        p = p * pl.reciprocal(jnp.sum(p, axis=-1, keepdims=True), approx=True)
        oh = jnp.einsum("bqk,bkd->bqd", p.astype(bf16), vh,
                        preferred_element_type=jnp.float32)     # (TB, S, hd)
        head_scr[:, lo:lo + hd] = oh.reshape(N, hd)

    attn = jnp.dot(head_scr[...].astype(bf16), wo,
                   preferred_element_type=jnp.float32) + out_b

    x = _layer_norm(x + attn, n1_w, n1_b)

    # ---- feed-forward (relu) ----
    h1 = jnp.dot(x.astype(bf16), l1_wT_ref[0],
                 preferred_element_type=jnp.float32) + l1_b
    h1 = jnp.maximum(h1, 0.0)
    ff = jnp.dot(h1.astype(bf16), l2_wT_ref[0],
                 preferred_element_type=jnp.float32) + l2_b
    x = _layer_norm(x + ff, n2_w, n2_b)

    x_scr[...] = x

    # ---- final projection: only the last sequence position of each element ----
    # NOTE: o_ref's block index is constant along the layer axis, so the block
    # stays resident and is only written back after this final write.
    @pl.when(l == num_l - 1)
    def _():
        x_last = x_scr[pl.ds(S - 1, TB, stride=S), :]           # (TB, D)
        out = jnp.dot(x_last.astype(bf16), fc_wT_ref[...],
                      preferred_element_type=jnp.float32) + fc_b_ref[...]
        o_ref[0] = out                                          # (TB, O_pad)


# ----------------------------- parameter prep --------------------------------


def positional_encoding_table(max_len, d_model):
    position = jnp.arange(max_len, dtype=jnp.float32)[:, None]
    div_term = jnp.exp(jnp.arange(0, d_model, 2, dtype=jnp.float32)
                       * (-math.log(10000.0) / d_model))
    pe = jnp.zeros((max_len, d_model), jnp.float32)
    pe = pe.at[:, 0::2].set(jnp.sin(position * div_term))
    pe = pe.at[:, 1::2].set(jnp.cos(position * div_term))
    return pe


def init_params(key, input_dim, seq_length, num_layers, num_heads,
                dim_feedforward, output_dim):
    D, F, O, L = seq_length, dim_feedforward, output_dim, num_layers

    def lin(k, fan_in, shape):
        bound = 1.0 / math.sqrt(fan_in)
        return jax.random.uniform(k, shape, jnp.float32, -bound, bound)

    keys = iter(jax.random.split(key, 8 * L + 8))
    p = {
        "emb_w": lin(next(keys), input_dim, (D, input_dim)),
        "emb_b": lin(next(keys), input_dim, (D,)),
        "in_proj_w": jnp.stack([lin(next(keys), D, (3 * D, D)) for _ in range(L)]),
        "in_proj_b": jnp.stack([lin(next(keys), D, (3 * D,)) for _ in range(L)]),
        "out_w": jnp.stack([lin(next(keys), D, (D, D)) for _ in range(L)]),
        "out_b": jnp.stack([lin(next(keys), D, (D,)) for _ in range(L)]),
        "lin1_w": jnp.stack([lin(next(keys), D, (F, D)) for _ in range(L)]),
        "lin1_b": jnp.stack([lin(next(keys), D, (F,)) for _ in range(L)]),
        "lin2_w": jnp.stack([lin(next(keys), F, (D, F)) for _ in range(L)]),
        "lin2_b": jnp.stack([lin(next(keys), F, (D,)) for _ in range(L)]),
        "norm1_w": jnp.ones((L, D), jnp.float32),
        "norm1_b": jnp.zeros((L, D), jnp.float32),
        "norm2_w": jnp.ones((L, D), jnp.float32),
        "norm2_b": jnp.zeros((L, D), jnp.float32),
        "fc_w": lin(next(keys), D, (O, D)),
        "fc_b": lin(next(keys), D, (O,)),
    }
    return p


def prepare_params(params, *, num_heads):
    """One-time weight preparation: transposes, lane-dense layouts, scale
    folding, small-tensor packing, bf16 casts and lane padding."""
    L = params["in_proj_w"].shape[0]
    D = params["in_proj_w"].shape[2]
    H = num_heads
    assert D % H == 0
    hd = D // H
    F = params["lin1_w"].shape[1]
    O = params["fc_w"].shape[0]
    O_pad = max(128, ((O + 127) // 128) * 128)       # lane-dense output block
    scale = 1.0 / math.sqrt(hd)
    bf16 = jnp.bfloat16

    in_w = params["in_proj_w"]                       # (L, 3D, D)
    in_b = params["in_proj_b"]                       # (L, 3D)

    # Lane-dense (D-wide) transposed weights; 1/sqrt(hd) folded into q.
    wqT = jnp.transpose(in_w[:, 0:D], (0, 2, 1)) * scale        # (L, D, D)
    wkT = jnp.transpose(in_w[:, D:2 * D], (0, 2, 1))
    wvT = jnp.transpose(in_w[:, 2 * D:3 * D], (0, 2, 1))
    woT = jnp.transpose(params["out_w"], (0, 2, 1))             # (L, D, D)
    wattn = jnp.stack([wqT, wkT, wvT, woT], axis=1).astype(bf16)  # (L, 4, D, D)

    # Packed per-layer small vectors -> one (L, 9, D) DMA per layer step.
    vecD = jnp.stack(
        [in_b[:, 0:D] * scale,          # bq (scale folded)
         in_b[:, D:2 * D],              # bk
         in_b[:, 2 * D:3 * D],          # bv
         params["out_b"],               # attention out-proj bias
         params["lin2_b"],              # FF second linear bias
         params["norm1_w"], params["norm1_b"],
         params["norm2_w"], params["norm2_b"]],
        axis=1).astype(jnp.float32)                              # (L, 9, D)
    vecF = params["lin1_b"].reshape(L, 1, F).astype(jnp.float32)

    fc_wT = jnp.zeros((D, O_pad), jnp.float32).at[:, :O].set(params["fc_w"].T)
    fc_b = jnp.zeros((1, O_pad), jnp.float32).at[0, :O].set(params["fc_b"])

    return {
        "emb_wT": params["emb_w"].T.astype(bf16),                # (I, D)
        "emb_b": params["emb_b"].reshape(1, D).astype(jnp.float32),
        "wattn": wattn,
        "l1_wT": jnp.transpose(params["lin1_w"], (0, 2, 1)).astype(bf16),  # (L, D, F)
        "l2_wT": jnp.transpose(params["lin2_w"], (0, 2, 1)).astype(bf16),  # (L, F, D)
        "vecD": vecD,
        "vecF": vecF,
        "fc_wT": fc_wT.astype(bf16),
        "fc_b": fc_b,
        "pe": positional_encoding_table(5000, D),                # (5000, D)
        "dims": (L, H, D, hd, F, O, O_pad),
    }


# ----------------------------- wrapper ---------------------------------------


def _vmem_budget_bytes(TB, S, I, D, F, O_pad):
    """Explicit VMEM budget (review: v7x has only 64 MiB physical VMEM)."""
    bfb, f32b = 2, 4
    per_layer_w = (4 * D * D + 2 * D * F) * bfb + (9 * D + F) * f32b
    resident_w = (I * D + D * O_pad) * bfb + (D + O_pad) * f32b
    per_block_io = (TB * S * I) * bfb + (TB * D + TB * O_pad) * f32b
    scratch = 2 * TB * S * D * f32b
    work = TB * S * (4 * D + F + 2 * S) * f32b      # rough live intermediates
    est = 2 * per_layer_w + resident_w + 2 * per_block_io + scratch + work
    # 2x headroom, floor 32 MiB, ceiling = smallest physical VMEM (v7x 64 MiB).
    return int(min(max(2 * est, 32 * 2 ** 20), 64 * 2 ** 20))


def transformer_forward(src, prep, *, block_batch=None, target_tokens=256):
    B, S, I = src.shape
    L, H, D, hd, F, O, O_pad = prep["dims"]

    # TB batch elements per grid step so the flattened (TB*S, D) tile fills the
    # MXU M-dimension (target ~256 tokens / step; review item 4).  Larger TB
    # also means num_bb is 1-2, so per-layer weights are re-streamed at most
    # once or twice (v5e/v6e item).  Pass block_batch explicitly to force
    # num_bb >= 2 on v7x when B allows (two-TensorCore item).
    TB = block_batch or max(1, min(B, max(1, target_tokens // S)))
    num_bb = -(-B // TB)
    B_pad = num_bb * TB

    src_p = src
    if B_pad != B:
        src_p = jnp.pad(src_p, ((0, B_pad - B), (0, 0), (0, 0)))
    src_p = src_p.astype(jnp.bfloat16)               # bf16 DMA (review item)
    pe = prep["pe"][:B_pad].reshape(B_pad, 1, D)

    inputs = [
        src_p, pe,
        prep["emb_wT"], prep["emb_b"],
        prep["wattn"],
        prep["l1_wT"], prep["l2_wT"],
        prep["vecD"], prep["vecF"],
        prep["fc_wT"], prep["fc_b"],
    ]

    batch3 = lambda b, l: (b, 0, 0)        # per-batch-block tensors (constant
                                           # along l -> fetched once per block)
    const2 = lambda b, l: (0, 0)           # shared embedding / fc weights
    layer3 = lambda b, l: (l, 0, 0)        # per-layer weight streaming
    layer4 = lambda b, l: (l, 0, 0, 0)

    in_specs = [
        pl.BlockSpec((TB, S, I), batch3),          # src
        pl.BlockSpec((TB, 1, D), batch3),          # pe
        pl.BlockSpec((I, D), const2),              # emb_wT
        pl.BlockSpec((1, D), const2),              # emb_b
        pl.BlockSpec((1, 4, D, D), layer4),        # wattn (q,k,v,o)
        pl.BlockSpec((1, D, F), layer3),           # l1_wT
        pl.BlockSpec((1, F, D), layer3),           # l2_wT
        pl.BlockSpec((1, 9, D), layer3),           # packed per-layer D-vectors
        pl.BlockSpec((1, 1, F), layer3),           # packed per-layer F-vector
        pl.BlockSpec((D, O_pad), const2),          # fc_wT
        pl.BlockSpec((1, O_pad), const2),          # fc_b
    ]

    out = pl.pallas_call(
        partial(transformer_kernel, num_heads=H),
        grid=(num_bb, L),
        in_specs=in_specs,
        out_specs=pl.BlockSpec((1, TB, O_pad), batch3),
        out_shape=jax.ShapeDtypeStruct((num_bb, TB, O_pad), jnp.float32),
        scratch_shapes=[pltpu.VMEM((TB * S, D), jnp.float32),
                        pltpu.VMEM((TB * S, D), jnp.float32)],
        compiler_params=pltpu.CompilerParams(
            dimension_semantics=("parallel", "arbitrary"),
            vmem_limit_bytes=_vmem_budget_bytes(TB, S, I, D, F, O_pad)),
    )(*inputs)
    return out.reshape(B_pad, O_pad)[:B, :O]


# ----------------------------- pure-JAX reference ----------------------------


def reference_forward(src, params, *, num_layers, num_heads):
    B, S, I = src.shape
    D = params["emb_w"].shape[0]
    hd = D // num_heads
    scale = 1.0 / math.sqrt(hd)

    def ln(x, w, b, eps=1e-5):
        mu = x.mean(-1, keepdims=True)
        var = ((x - mu) ** 2).mean(-1, keepdims=True)
        return (x - mu) / jnp.sqrt(var + eps) * w + b

    pe = positional_encoding_table(5000, D)[:B]
    x = src @ params["emb_w"].T + params["emb_b"]
    x = x + pe[:, None, :]
    for l in range(num_layers):
        qkv = x @ params["in_proj_w"][l].T + params["in_proj_b"][l]
        q, k, v = qkv[..., :D], qkv[..., D:2 * D], qkv[..., 2 * D:]
        q = q.reshape(B, S, num_heads, hd)
        k = k.reshape(B, S, num_heads, hd)
        v = v.reshape(B, S, num_heads, hd)
        s = jnp.einsum("bqhd,bkhd->bhqk", q, k) * scale
        p = jax.nn.softmax(s, axis=-1)
        a = jnp.einsum("bhqk,bkhd->bqhd", p, v).reshape(B, S, D)
        a = a @ params["out_w"][l].T + params["out_b"][l]
        x = ln(x + a, params["norm1_w"][l], params["norm1_b"][l])
        f = jax.nn.relu(x @ params["lin1_w"][l].T + params["lin1_b"][l])
        f = f @ params["lin2_w"][l].T + params["lin2_b"][l]
        x = ln(x + f, params["norm2_w"][l], params["norm2_b"][l])
    out = x @ params["fc_w"].T + params["fc_b"]
    return out[:, -1, :]


# ----------------------------- main ------------------------------------------


if __name__ == "__main__":
    batch = 2
    input_dim = 4
    seq_length = 8       # == d_model (per the module's construction)
    num_layers = 2
    num_heads = 2
    dim_feedforward = 32
    output_dim = 1

    key = jax.random.PRNGKey(0)
    k_x, k_p = jax.random.split(key)
    src = jax.random.normal(k_x, (batch, seq_length, input_dim), jnp.float32)
    params = init_params(k_p, input_dim, seq_length, num_layers, num_heads,
                         dim_feedforward, output_dim)

    prep = prepare_params(params, num_heads=num_heads)   # one-time weight prep

    out = transformer_forward(src, prep)
    out = jax.block_until_ready(out)

    ref = reference_forward(src, params,
                            num_layers=num_layers, num_heads=num_heads)
    assert out.shape == (batch, output_dim)
    # bf16 matmul inputs / bf16 src (f32 accumulate) vs full-f32 reference.
    assert jnp.allclose(out, ref, atol=5e-2, rtol=5e-2), (out, ref)

    print("KERNEL_OK")
</pallas_src>

<mosaic_0001>
module attributes {stable_mosaic.version = 11 : i64} {
  func.func @transformer_kernel(%arg0: i32, %arg1: i32, %arg2: memref<2x8x4xbf16, #tpu.memory_space<vmem>>, %arg3: memref<2x1x8xf32, #tpu.memory_space<vmem>>, %arg4: memref<4x8xbf16, #tpu.memory_space<vmem>>, %arg5: memref<1x8xf32, #tpu.memory_space<vmem>>, %arg6: memref<1x4x8x8xbf16, #tpu.memory_space<vmem>>, %arg7: memref<1x8x32xbf16, #tpu.memory_space<vmem>>, %arg8: memref<1x32x8xbf16, #tpu.memory_space<vmem>>, %arg9: memref<1x9x8xf32, #tpu.memory_space<vmem>>, %arg10: memref<1x1x32xf32, #tpu.memory_space<vmem>>, %arg11: memref<8x128xbf16, #tpu.memory_space<vmem>>, %arg12: memref<1x128xf32, #tpu.memory_space<vmem>>, %arg13: memref<1x2x128xf32, #tpu.memory_space<vmem>>, %arg14: memref<16x8xf32, #tpu.memory_space<vmem>>, %arg15: memref<16x8xf32, #tpu.memory_space<vmem>>) attributes {dimension_semantics = [#tpu.dimension_semantics<parallel>, #tpu.dimension_semantics<arbitrary>], iteration_bounds = array<i64: 1, 2>, scalar_prefetch = 0 : i64, scratch_operands = 2 : i64, tpu.core_type = #tpu.core_type<tc>, window_params = [{transform_indices = @transform_0, window_bounds = array<i64: 2, 8, 4>}, {transform_indices = @transform_1, window_bounds = array<i64: 2, 1, 8>}, {pipeline_mode = #tpu.pipeline_mode<synchronous>, transform_indices = @transform_2, window_bounds = array<i64: 4, 8>}, {pipeline_mode = #tpu.pipeline_mode<synchronous>, transform_indices = @transform_3, window_bounds = array<i64: 1, 8>}, {transform_indices = @transform_4, window_bounds = array<i64: 1, 4, 8, 8>}, {transform_indices = @transform_5, window_bounds = array<i64: 1, 8, 32>}, {transform_indices = @transform_6, window_bounds = array<i64: 1, 32, 8>}, {transform_indices = @transform_7, window_bounds = array<i64: 1, 9, 8>}, {transform_indices = @transform_8, window_bounds = array<i64: 1, 1, 32>}, {pipeline_mode = #tpu.pipeline_mode<synchronous>, transform_indices = @transform_9, window_bounds = array<i64: 8, 128>}, {pipeline_mode = #tpu.pipeline_mode<synchronous>, transform_indices = @transform_10, window_bounds = array<i64: 1, 128>}, {transform_indices = @transform_11, window_bounds = array<i64: 1, 2, 128>}]} {
    %c0_i32 = arith.constant 0 : i32
    %0 = arith.cmpi eq, %arg1, %c0_i32 : i32
    %1 = arith.extui %0 : i1 to i32
    %c0_i32_0 = arith.constant 0 : i32
    %2 = arith.cmpi ne, %1, %c0_i32_0 : i32
    scf.if %2 {
      %c0_59 = arith.constant 0 : index
      %c0_60 = arith.constant 0 : index
      %c0_61 = arith.constant 0 : index
      %146 = vector.load %arg2[%c0_59, %c0_60, %c0_61] : memref<2x8x4xbf16, #tpu.memory_space<vmem>>, vector<2x8x4xbf16>
      %147 = vector.shape_cast %146 : vector<2x8x4xbf16> to vector<16x4xbf16>
      %c0_62 = arith.constant 0 : index
      %c0_63 = arith.constant 0 : index
      %148 = vector.load %arg4[%c0_62, %c0_63] : memref<4x8xbf16, #tpu.memory_space<vmem>>, vector<4x8xbf16>
      %cst_64 = arith.constant dense<0.000000e+00> : vector<16x8xf32>
      %149 = tpu.matmul %147, %148, %cst_64 {dimension_numbers = #tpu.dot_dimension_numbers<[1], [0], [0], [1], [0, 0, 1, 1], [], []>} : vector<16x4xbf16>, vector<4x8xbf16>, vector<16x8xf32> -> vector<16x8xf32>
      %c0_65 = arith.constant 0 : index
      %c0_66 = arith.constant 0 : index
      %150 = vector.load %arg5[%c0_65, %c0_66] : memref<1x8xf32, #tpu.memory_space<vmem>>, vector<1x8xf32>
      %151 = vector.broadcast %150 : vector<1x8xf32> to vector<16x8xf32>
      %152 = arith.addf %149, %151 : vector<16x8xf32>
      %153 = vector.shape_cast %152 : vector<16x8xf32> to vector<2x8x8xf32>
      %c0_67 = arith.constant 0 : index
      %c0_68 = arith.constant 0 : index
      %c0_69 = arith.constant 0 : index
      %154 = vector.load %arg3[%c0_67, %c0_68, %c0_69] : memref<2x1x8xf32, #tpu.memory_space<vmem>>, vector<2x1x8xf32>
      %155 = vector.broadcast %154 : vector<2x1x8xf32> to vector<2x8x8xf32>
      %156 = arith.addf %153, %155 : vector<2x8x8xf32>
      %157 = vector.shape_cast %156 : vector<2x8x8xf32> to vector<16x8xf32>
      %c0_70 = arith.constant 0 : index
      %c0_71 = arith.constant 0 : index
      %158 = vector.load %arg14[%c0_70, %c0_71] : memref<16x8xf32, #tpu.memory_space<vmem>>, vector<16x8xf32>
      tpu.vector_store %arg14[%c0_70, %c0_71], %157 {strides = array<i32>} : memref<16x8xf32, #tpu.memory_space<vmem>>, vector<16x8xf32>,
    } else {
    }
    %c0 = arith.constant 0 : index
    %c0_1 = arith.constant 0 : index
    %c0_2 = arith.constant 0 : index
    %3 = vector.load %arg9[%c0, %c0_1, %c0_2] : memref<1x9x8xf32, #tpu.memory_space<vmem>>, vector<1x9x8xf32>
    %4 = vector.shape_cast %3 : vector<1x9x8xf32> to vector<9x8xf32>
    %5 = vector.extract_strided_slice %4 {offsets = [0, 0], sizes = [1, 8], strides = [1, 1]} : vector<9x8xf32> to vector<1x8xf32>
    %6 = vector.extract_strided_slice %4 {offsets = [1, 0], sizes = [1, 8], strides = [1, 1]} : vector<9x8xf32> to vector<1x8xf32>
    %7 = vector.extract_strided_slice %4 {offsets = [2, 0], sizes = [1, 8], strides = [1, 1]} : vector<9x8xf32> to vector<1x8xf32>
    %8 = vector.extract_strided_slice %4 {offsets = [3, 0], sizes = [1, 8], strides = [1, 1]} : vector<9x8xf32> to vector<1x8xf32>
    %9 = vector.extract_strided_slice %4 {offsets = [4, 0], sizes = [1, 8], strides = [1, 1]} : vector<9x8xf32> to vector<1x8xf32>
    %10 = vector.extract_strided_slice %4 {offsets = [5, 0], sizes = [1, 8], strides = [1, 1]} : vector<9x8xf32> to vector<1x8xf32>
    %11 = vector.extract_strided_slice %4 {offsets = [6, 0], sizes = [1, 8], strides = [1, 1]} : vector<9x8xf32> to vector<1x8xf32>
    %12 = vector.extract_strided_slice %4 {offsets = [7, 0], sizes = [1, 8], strides = [1, 1]} : vector<9x8xf32> to vector<1x8xf32>
    %13 = vector.extract_strided_slice %4 {offsets = [8, 0], sizes = [1, 8], strides = [1, 1]} : vector<9x8xf32> to vector<1x8xf32>
    %c0_3 = arith.constant 0 : index
    %c0_4 = arith.constant 0 : index
    %c0_5 = arith.constant 0 : index
    %14 = vector.load %arg10[%c0_3, %c0_4, %c0_5] : memref<1x1x32xf32, #tpu.memory_space<vmem>>, vector<1x1x32xf32>
    %15 = vector.shape_cast %14 : vector<1x1x32xf32> to vector<1x32xf32>
    %c0_6 = arith.constant 0 : index
    %c0_7 = arith.constant 0 : index
    %c0_8 = arith.constant 0 : index
    %c0_9 = arith.constant 0 : index
    %16 = vector.load %arg6[%c0_6, %c0_7, %c0_8, %c0_9] : memref<1x4x8x8xbf16, #tpu.memory_space<vmem>>, vector<1x1x8x8xbf16>
    %17 = vector.shape_cast %16 : vector<1x1x8x8xbf16> to vector<8x8xbf16>
    %c0_10 = arith.constant 0 : index
    %c1 = arith.constant 1 : index
    %c0_11 = arith.constant 0 : index
    %c0_12 = arith.constant 0 : index
    %18 = vector.load %arg6[%c0_10, %c1, %c0_11, %c0_12] : memref<1x4x8x8xbf16, #tpu.memory_space<vmem>>, vector<1x1x8x8xbf16>
    %19 = vector.shape_cast %18 : vector<1x1x8x8xbf16> to vector<8x8xbf16>
    %c0_13 = arith.constant 0 : index
    %c2 = arith.constant 2 : index
    %c0_14 = arith.constant 0 : index
    %c0_15 = arith.constant 0 : index
    %20 = vector.load %arg6[%c0_13, %c2, %c0_14, %c0_15] : memref<1x4x8x8xbf16, #tpu.memory_space<vmem>>, vector<1x1x8x8xbf16>
    %21 = vector.shape_cast %20 : vector<1x1x8x8xbf16> to vector<8x8xbf16>
    %c0_16 = arith.constant 0 : index
    %c3 = arith.constant 3 : index
    %c0_17 = arith.constant 0 : index
    %c0_18 = arith.constant 0 : index
    %22 = vector.load %arg6[%c0_16, %c3, %c0_17, %c0_18] : memref<1x4x8x8xbf16, #tpu.memory_space<vmem>>, vector<1x1x8x8xbf16>
    %23 = vector.shape_cast %22 : vector<1x1x8x8xbf16> to vector<8x8xbf16>
    %c0_19 = arith.constant 0 : index
    %c0_20 = arith.constant 0 : index
    %24 = vector.load %arg14[%c0_19, %c0_20] : memref<16x8xf32, #tpu.memory_space<vmem>>, vector<16x8xf32>
    %25 = arith.truncf %24 : vector<16x8xf32> to vector<16x8xbf16>
    %cst = arith.constant dense<0.000000e+00> : vector<16x8xf32>
    %26 = tpu.matmul %25, %17, %cst {dimension_numbers = #tpu.dot_dimension_numbers<[1], [0], [0], [1], [0, 0, 1, 1], [], []>} : vector<16x8xbf16>, vector<8x8xbf16>, vector<16x8xf32> -> vector<16x8xf32>
    %27 = vector.broadcast %5 : vector<1x8xf32> to vector<16x8xf32>
    %28 = arith.addf %26, %27 : vector<16x8xf32>
    %cst_21 = arith.constant dense<0.000000e+00> : vector<16x8xf32>
    %29 = tpu.matmul %25, %19, %cst_21 {dimension_numbers = #tpu.dot_dimension_numbers<[1], [0], [0], [1], [0, 0, 1, 1], [], []>} : vector<16x8xbf16>, vector<8x8xbf16>, vector<16x8xf32> -> vector<16x8xf32>
    %30 = vector.broadcast %6 : vector<1x8xf32> to vector<16x8xf32>
    %31 = arith.addf %29, %30 : vector<16x8xf32>
    %cst_22 = arith.constant dense<0.000000e+00> : vector<16x8xf32>
    %32 = tpu.matmul %25, %21, %cst_22 {dimension_numbers = #tpu.dot_dimension_numbers<[1], [0], [0], [1], [0, 0, 1, 1], [], []>} : vector<16x8xbf16>, vector<8x8xbf16>, vector<16x8xf32> -> vector<16x8xf32>
    %33 = vector.broadcast %7 : vector<1x8xf32> to vector<16x8xf32>
    %34 = arith.addf %32, %33 : vector<16x8xf32>
    %35 = vector.shape_cast %28 : vector<16x8xf32> to vector<2x8x8xf32>
    %36 = arith.truncf %35 : vector<2x8x8xf32> to vector<2x8x8xbf16>
    %37 = vector.shape_cast %31 : vector<16x8xf32> to vector<2x8x8xf32>
    %38 = arith.truncf %37 : vector<2x8x8xf32> to vector<2x8x8xbf16>
    %39 = vector.shape_cast %34 : vector<16x8xf32> to vector<2x8x8xf32>
    %40 = arith.truncf %39 : vector<2x8x8xf32> to vector<2x8x8xbf16>
    %41 = vector.extract_strided_slice %36 {offsets = [0, 0, 0], sizes = [2, 8, 4], strides = [1, 1, 1]} : vector<2x8x8xbf16> to vector<2x8x4xbf16>
    %42 = vector.extract_strided_slice %38 {offsets = [0, 0, 0], sizes = [2, 8, 4], strides = [1, 1, 1]} : vector<2x8x8xbf16> to vector<2x8x4xbf16>
    %43 = vector.extract_strided_slice %40 {offsets = [0, 0, 0], sizes = [2, 8, 4], strides = [1, 1, 1]} : vector<2x8x8xbf16> to vector<2x8x4xbf16>
    "tpu.trace_start"() <{level = 10 : i32, message = "bqd,bkd->bqk"}> : () -> ()
    %cst_23 = arith.constant dense<0.000000e+00> : vector<2x8x8xf32>
    %44 = tpu.matmul %41, %42, %cst_23 {dimension_numbers = #tpu.dot_dimension_numbers<[2], [2], [1], [1], [0, 0, 0, 1, 1, 1], [0], [0]>} : vector<2x8x4xbf16>, vector<2x8x4xbf16>, vector<2x8x8xf32> -> vector<2x8x8xf32>
    "tpu.trace_stop"() : () -> ()
    %cst_24 = arith.constant dense<0xFF800000> : vector<2x8xf32>
    %45 = vector.multi_reduction <maximumf>, %44, %cst_24 [2] : vector<2x8x8xf32> to vector<2x8xf32>
    %46 = vector.shape_cast %45 : vector<2x8xf32> to vector<2x8x1xf32>
    %47 = vector.broadcast %46 : vector<2x8x1xf32> to vector<2x8x8xf32>
    %48 = arith.subf %44, %47 : vector<2x8x8xf32>
    %49 = math.exp %48 : vector<2x8x8xf32>
    %cst_25 = arith.constant dense<0.000000e+00> : vector<2x8xf32>
    %50 = vector.multi_reduction <add>, %49, %cst_25 [2] : vector<2x8x8xf32> to vector<2x8xf32>
    %51 = vector.shape_cast %50 : vector<2x8xf32> to vector<2x8x1xf32>
    %52 = tpu.reciprocal %51 {approx = true} : vector<2x8x1xf32> -> vector<2x8x1xf32>
    %53 = vector.broadcast %52 : vector<2x8x1xf32> to vector<2x8x8xf32>
    %54 = arith.mulf %49, %53 : vector<2x8x8xf32>
    %55 = arith.truncf %54 : vector<2x8x8xf32> to vector<2x8x8xbf16>
    "tpu.trace_start"() <{level = 10 : i32, message = "bqk,bkd->bqd"}> : () -> ()
    %cst_26 = arith.constant dense<0.000000e+00> : vector<2x8x4xf32>
    %56 = tpu.matmul %55, %43, %cst_26 {dimension_numbers = #tpu.dot_dimension_numbers<[2], [1], [1], [2], [0, 0, 0, 1, 1, 2], [0], [0]>} : vector<2x8x8xbf16>, vector<2x8x4xbf16>, vector<2x8x4xf32> -> vector<2x8x4xf32>
    "tpu.trace_stop"() : () -> ()
    %57 = vector.shape_cast %56 : vector<2x8x4xf32> to vector<16x4xf32>
    %c0_27 = arith.constant 0 : index
    %c0_28 = arith.constant 0 : index
    %58 = vector.load %arg15[%c0_27, %c0_28] : memref<16x8xf32, #tpu.memory_space<vmem>>, vector<16x4xf32>
    tpu.vector_store %arg15[%c0_27, %c0_28], %57 {strides = array<i32>} : memref<16x8xf32, #tpu.memory_space<vmem>>, vector<16x4xf32>,
    %59 = vector.extract_strided_slice %36 {offsets = [0, 0, 4], sizes = [2, 8, 4], strides = [1, 1, 1]} : vector<2x8x8xbf16> to vector<2x8x4xbf16>
    %60 = vector.extract_strided_slice %38 {offsets = [0, 0, 4], sizes = [2, 8, 4], strides = [1, 1, 1]} : vector<2x8x8xbf16> to vector<2x8x4xbf16>
    %61 = vector.extract_strided_slice %40 {offsets = [0, 0, 4], sizes = [2, 8, 4], strides = [1, 1, 1]} : vector<2x8x8xbf16> to vector<2x8x4xbf16>
    "tpu.trace_start"() <{level = 10 : i32, message = "bqd,bkd->bqk"}> : () -> ()
    %cst_29 = arith.constant dense<0.000000e+00> : vector<2x8x8xf32>
    %62 = tpu.matmul %59, %60, %cst_29 {dimension_numbers = #tpu.dot_dimension_numbers<[2], [2], [1], [1], [0, 0, 0, 1, 1, 1], [0], [0]>} : vector<2x8x4xbf16>, vector<2x8x4xbf16>, vector<2x8x8xf32> -> vector<2x8x8xf32>
    "tpu.trace_stop"() : () -> ()
    %cst_30 = arith.constant dense<0xFF800000> : vector<2x8xf32>
    %63 = vector.multi_reduction <maximumf>, %62, %cst_30 [2] : vector<2x8x8xf32> to vector<2x8xf32>
    %64 = vector.shape_cast %63 : vector<2x8xf32> to vector<2x8x1xf32>
    %65 = vector.broadcast %64 : vector<2x8x1xf32> to vector<2x8x8xf32>
    %66 = arith.subf %62, %65 : vector<2x8x8xf32>
    %67 = math.exp %66 : vector<2x8x8xf32>
    %cst_31 = arith.constant dense<0.000000e+00> : vector<2x8xf32>
    %68 = vector.multi_reduction <add>, %67, %cst_31 [2] : vector<2x8x8xf32> to vector<2x8xf32>
    %69 = vector.shape_cast %68 : vector<2x8xf32> to vector<2x8x1xf32>
    %70 = tpu.reciprocal %69 {approx = true} : vector<2x8x1xf32> -> vector<2x8x1xf32>
    %71 = vector.broadcast %70 : vector<2x8x1xf32> to vector<2x8x8xf32>
    %72 = arith.mulf %67, %71 : vector<2x8x8xf32>
    %73 = arith.truncf %72 : vector<2x8x8xf32> to vector<2x8x8xbf16>
    "tpu.trace_start"() <{level = 10 : i32, message = "bqk,bkd->bqd"}> : () -> ()
    %cst_32 = arith.constant dense<0.000000e+00> : vector<2x8x4xf32>
    %74 = tpu.matmul %73, %61, %cst_32 {dimension_numbers = #tpu.dot_dimension_numbers<[2], [1], [1], [2], [0, 0, 0, 1, 1, 2], [0], [0]>} : vector<2x8x8xbf16>, vector<2x8x4xbf16>, vector<2x8x4xf32> -> vector<2x8x4xf32>
    "tpu.trace_stop"() : () -> ()
    %75 = vector.shape_cast %74 : vector<2x8x4xf32> to vector<16x4xf32>
    %c0_33 = arith.constant 0 : index
    %c4 = arith.constant 4 : index
    %76 = vector.load %arg15[%c0_33, %c4] : memref<16x8xf32, #tpu.memory_space<vmem>>, vector<16x4xf32>
    tpu.vector_store %arg15[%c0_33, %c4], %75 {strides = array<i32>} : memref<16x8xf32, #tpu.memory_space<vmem>>, vector<16x4xf32>,
    %c0_34 = arith.constant 0 : index
    %c0_35 = arith.constant 0 : index
    %77 = vector.load %arg15[%c0_34, %c0_35] : memref<16x8xf32, #tpu.memory_space<vmem>>, vector<16x8xf32>
    %78 = arith.truncf %77 : vector<16x8xf32> to vector<16x8xbf16>
    %cst_36 = arith.constant dense<0.000000e+00> : vector<16x8xf32>
    %79 = tpu.matmul %78, %23, %cst_36 {dimension_numbers = #tpu.dot_dimension_numbers<[1], [0], [0], [1], [0, 0, 1, 1], [], []>} : vector<16x8xbf16>, vector<8x8xbf16>, vector<16x8xf32> -> vector<16x8xf32>
    %80 = vector.broadcast %8 : vector<1x8xf32> to vector<16x8xf32>
    %81 = arith.addf %79, %80 : vector<16x8xf32>
    %82 = arith.addf %24, %81 : vector<16x8xf32>
    %cst_37 = arith.constant dense<0.000000e+00> : vector<16xf32>
    %83 = vector.multi_reduction <add>, %82, %cst_37 [1] : vector<16x8xf32> to vector<16xf32>
    %84 = vector.shape_cast %83 : vector<16xf32> to vector<16x1xf32>
    %cst_38 = arith.constant 8.000000e+00 : f32
    %85 = vector.broadcast %cst_38 : f32 to vector<16x1xf32>
    %86 = arith.divf %84, %85 : vector<16x1xf32>
    %87 = vector.broadcast %86 : vector<16x1xf32> to vector<16x8xf32>
    %88 = arith.subf %82, %87 : vector<16x8xf32>
    %89 = arith.mulf %88, %88 : vector<16x8xf32>
    %cst_39 = arith.constant dense<0.000000e+00> : vector<16xf32>
    %90 = vector.multi_reduction <add>, %89, %cst_39 [1] : vector<16x8xf32> to vector<16xf32>
    %91 = vector.shape_cast %90 : vector<16xf32> to vector<16x1xf32>
    %cst_40 = arith.constant 8.000000e+00 : f32
    %92 = vector.broadcast %cst_40 : f32 to vector<16x1xf32>
    %93 = arith.divf %91, %92 : vector<16x1xf32>
    %94 = vector.broadcast %86 : vector<16x1xf32> to vector<16x8xf32>
    %95 = arith.subf %82, %94 : vector<16x8xf32>
    %cst_41 = arith.constant 9.99999974E-6 : f32
    %96 = vector.broadcast %cst_41 : f32 to vector<16x1xf32>
    %97 = arith.addf %93, %96 : vector<16x1xf32>
    %98 = math.rsqrt %97 : vector<16x1xf32>
    %99 = vector.broadcast %98 : vector<16x1xf32> to vector<16x8xf32>
    %100 = arith.mulf %95, %99 : vector<16x8xf32>
    %101 = vector.broadcast %10 : vector<1x8xf32> to vector<16x8xf32>
    %102 = arith.mulf %100, %101 : vector<16x8xf32>
    %103 = vector.broadcast %11 : vector<1x8xf32> to vector<16x8xf32>
    %104 = arith.addf %102, %103 : vector<16x8xf32>
    %105 = arith.truncf %104 : vector<16x8xf32> to vector<16x8xbf16>
    %c0_42 = arith.constant 0 : index
    %c0_43 = arith.constant 0 : index
    %c0_44 = arith.constant 0 : index
    %106 = vector.load %arg7[%c0_42, %c0_43, %c0_44] : memref<1x8x32xbf16, #tpu.memory_space<vmem>>, vector<1x8x32xbf16>
    %107 = vector.shape_cast %106 : vector<1x8x32xbf16> to vector<8x32xbf16>
    %cst_45 = arith.constant dense<0.000000e+00> : vector<16x32xf32>
    %108 = tpu.matmul %105, %107, %cst_45 {dimension_numbers = #tpu.dot_dimension_numbers<[1], [0], [0], [1], [0, 0, 1, 1], [], []>} : vector<16x8xbf16>, vector<8x32xbf16>, vector<16x32xf32> -> vector<16x32xf32>
    %109 = vector.broadcast %15 : vector<1x32xf32> to vector<16x32xf32>
    %110 = arith.addf %108, %109 : vector<16x32xf32>
    %cst_46 = arith.constant 0.000000e+00 : f32
    %111 = vector.broadcast %cst_46 : f32 to vector<16x32xf32>
    %112 = arith.maximumf %110, %111 : vector<16x32xf32>
    %113 = arith.truncf %112 : vector<16x32xf32> to vector<16x32xbf16>
    %c0_47 = arith.constant 0 : index
    %c0_48 = arith.constant 0 : index
    %c0_49 = arith.constant 0 : index
    %114 = vector.load %arg8[%c0_47, %c0_48, %c0_49] : memref<1x32x8xbf16, #tpu.memory_space<vmem>>, vector<1x32x8xbf16>
    %115 = vector.shape_cast %114 : vector<1x32x8xbf16> to vector<32x8xbf16>
    %cst_50 = arith.constant dense<0.000000e+00> : vector<16x8xf32>
    %116 = tpu.matmul %113, %115, %cst_50 {dimension_numbers = #tpu.dot_dimension_numbers<[1], [0], [0], [1], [0, 0, 1, 1], [], []>} : vector<16x32xbf16>, vector<32x8xbf16>, vector<16x8xf32> -> vector<16x8xf32>
    %117 = vector.broadcast %9 : vector<1x8xf32> to vector<16x8xf32>
    %118 = arith.addf %116, %117 : vector<16x8xf32>
    %119 = arith.addf %104, %118 : vector<16x8xf32>
    %cst_51 = arith.constant dense<0.000000e+00> : vector<16xf32>
    %120 = vector.multi_reduction <add>, %119, %cst_51 [1] : vector<16x8xf32> to vector<16xf32>
    %121 = vector.shape_cast %120 : vector<16xf32> to vector<16x1xf32>
    %cst_52 = arith.constant 8.000000e+00 : f32
    %122 = vector.broadcast %cst_52 : f32 to vector<16x1xf32>
    %123 = arith.divf %121, %122 : vector<16x1xf32>
    %124 = vector.broadcast %123 : vector<16x1xf32> to vector<16x8xf32>
    %125 = arith.subf %119, %124 : vector<16x8xf32>
    %126 = arith.mulf %125, %125 : vector<16x8xf32>
    %cst_53 = arith.constant dense<0.000000e+00> : vector<16xf32>
    %127 = vector.multi_reduction <add>, %126, %cst_53 [1] : vector<16x8xf32> to vector<16xf32>
    %128 = vector.shape_cast %127 : vector<16xf32> to vector<16x1xf32>
    %cst_54 = arith.constant 8.000000e+00 : f32
    %129 = vector.broadcast %cst_54 : f32 to vector<16x1xf32>
    %130 = arith.divf %128, %129 : vector<16x1xf32>
    %131 = vector.broadcast %123 : vector<16x1xf32> to vector<16x8xf32>
    %132 = arith.subf %119, %131 : vector<16x8xf32>
    %cst_55 = arith.constant 9.99999974E-6 : f32
    %133 = vector.broadcast %cst_55 : f32 to vector<16x1xf32>
    %134 = arith.addf %130, %133 : vector<16x1xf32>
    %135 = math.rsqrt %134 : vector<16x1xf32>
    %136 = vector.broadcast %135 : vector<16x1xf32> to vector<16x8xf32>
    %137 = arith.mulf %132, %136 : vector<16x8xf32>
    %138 = vector.broadcast %12 : vector<1x8xf32> to vector<16x8xf32>
    %139 = arith.mulf %137, %138 : vector<16x8xf32>
    %140 = vector.broadcast %13 : vector<1x8xf32> to vector<16x8xf32>
    %141 = arith.addf %139, %140 : vector<16x8xf32>
    %c0_56 = arith.constant 0 : index
    %c0_57 = arith.constant 0 : index
    %142 = vector.load %arg14[%c0_56, %c0_57] : memref<16x8xf32, #tpu.memory_space<vmem>>, vector<16x8xf32>
    tpu.vector_store %arg14[%c0_56, %c0_57], %141 {strides = array<i32>} : memref<16x8xf32, #tpu.memory_space<vmem>>, vector<16x8xf32>,
    %c1_i32 = arith.constant 1 : i32
    %143 = arith.cmpi eq, %arg1, %c1_i32 : i32
    %144 = arith.extui %143 : i1 to i32
    %c0_i32_58 = arith.constant 0 : i32
    %145 = arith.cmpi ne, %144, %c0_i32_58 : i32
    scf.if %145 {
      %c7 = arith.constant 7 : index
      %c0_59 = arith.constant 0 : index
      %146 = tpu.strided_load %arg14[%c7, %c0_59] {strides = array<i32: 8, 1>} : memref<16x8xf32, #tpu.memory_space<vmem>>, vector<2x8xf32>
      %147 = arith.truncf %146 : vector<2x8xf32> to vector<2x8xbf16>
      %c0_60 = arith.constant 0 : index
      %c0_61 = arith.constant 0 : index
      %148 = vector.load %arg11[%c0_60, %c0_61] : memref<8x128xbf16, #tpu.memory_space<vmem>>, vector<8x128xbf16>
      %cst_62 = arith.constant dense<0.000000e+00> : vector<2x128xf32>
      %149 = tpu.matmul %147, %148, %cst_62 {dimension_numbers = #tpu.dot_dimension_numbers<[1], [0], [0], [1], [0, 0, 1, 1], [], []>} : vector<2x8xbf16>, vector<8x128xbf16>, vector<2x128xf32> -> vector<2x128xf32>
      %c0_63 = arith.constant 0 : index
      %c0_64 = arith.constant 0 : index
      %150 = vector.load %arg12[%c0_63, %c0_64] : memref<1x128xf32, #tpu.memory_space<vmem>>, vector<1x128xf32>
      %151 = vector.broadcast %150 : vector<1x128xf32> to vector<2x128xf32>
      %152 = arith.addf %149, %151 : vector<2x128xf32>
      %c0_65 = arith.constant 0 : index
      %c0_66 = arith.constant 0 : index
      %c0_67 = arith.constant 0 : index
      %153 = vector.load %arg13[%c0_65, %c0_66, %c0_67] : memref<1x2x128xf32, #tpu.memory_space<vmem>>, vector<1x2x128xf32>
      %154 = vector.shape_cast %153 : vector<1x2x128xf32> to vector<2x128xf32>
      %155 = vector.shape_cast %152 : vector<2x128xf32> to vector<1x2x128xf32>
      tpu.vector_store %arg13[%c0_65, %c0_66, %c0_67], %155 {strides = array<i32>} : memref<1x2x128xf32, #tpu.memory_space<vmem>>, vector<1x2x128xf32>,
    } else {
    }
    return
  }
  func.func @transform_0(%arg0: i32, %arg1: i32) -> (i32, i32, i32) {
    %c0_i32 = arith.constant 0 : i32
    %c0_i32_0 = arith.constant 0 : i32
    %c0_i32_1 = arith.constant 0 : i32
    return %arg0, %c0_i32, %c0_i32_0 : i32, i32, i32
  }
  func.func @transform_1(%arg0: i32, %arg1: i32) -> (i32, i32, i32) {
    %c0_i32 = arith.constant 0 : i32
    %c0_i32_0 = arith.constant 0 : i32
    %c0_i32_1 = arith.constant 0 : i32
    return %arg0, %c0_i32, %c0_i32_0 : i32, i32, i32
  }
  func.func @transform_2(%arg0: i32, %arg1: i32) -> (i32, i32) {
    %c0_i32 = arith.constant 0 : i32
    %c0_i32_0 = arith.constant 0 : i32
    %c0_i32_1 = arith.constant 0 : i32
    return %c0_i32, %c0_i32_0 : i32, i32
  }
  func.func @transform_3(%arg0: i32, %arg1: i32) -> (i32, i32) {
    %c0_i32 = arith.constant 0 : i32
    %c0_i32_0 = arith.constant 0 : i32
    %c0_i32_1 = arith.constant 0 : i32
    return %c0_i32, %c0_i32_0 : i32, i32
  }
  func.func @transform_4(%arg0: i32, %arg1: i32) -> (i32, i32, i32, i32) {
    %c0_i32 = arith.constant 0 : i32
    %c0_i32_0 = arith.constant 0 : i32
    %c0_i32_1 = arith.constant 0 : i32
    %c0_i32_2 = arith.constant 0 : i32
    return %arg1, %c0_i32, %c0_i32_0, %c0_i32_1 : i32, i32, i32, i32
  }
  func.func @transform_5(%arg0: i32, %arg1: i32) -> (i32, i32, i32) {
    %c0_i32 = arith.constant 0 : i32
    %c0_i32_0 = arith.constant 0 : i32
    %c0_i32_1 = arith.constant 0 : i32
    return %arg1, %c0_i32, %c0_i32_0 : i32, i32, i32
  }
  func.func @transform_6(%arg0: i32, %arg1: i32) -> (i32, i32, i32) {
    %c0_i32 = arith.constant 0 : i32
    %c0_i32_0 = arith.constant 0 : i32
    %c0_i32_1 = arith.constant 0 : i32
    return %arg1, %c0_i32, %c0_i32_0 : i32, i32, i32
  }
  func.func @transform_7(%arg0: i32, %arg1: i32) -> (i32, i32, i32) {
    %c0_i32 = arith.constant 0 : i32
    %c0_i32_0 = arith.constant 0 : i32
    %c0_i32_1 = arith.constant 0 : i32
    return %arg1, %c0_i32, %c0_i32_0 : i32, i32, i32
  }
  func.func @transform_8(%arg0: i32, %arg1: i32) -> (i32, i32, i32) {
    %c0_i32 = arith.constant 0 : i32
    %c0_i32_0 = arith.constant 0 : i32
    %c0_i32_1 = arith.constant 0 : i32
    return %arg1, %c0_i32, %c0_i32_0 : i32, i32, i32
  }
  func.func @transform_9(%arg0: i32, %arg1: i32) -> (i32, i32) {
    %c0_i32 = arith.constant 0 : i32
    %c0_i32_0 = arith.constant 0 : i32
    %c0_i32_1 = arith.constant 0 : i32
    return %c0_i32, %c0_i32_0 : i32, i32
  }
  func.func @transform_10(%arg0: i32, %arg1: i32) -> (i32, i32) {
    %c0_i32 = arith.constant 0 : i32
    %c0_i32_0 = arith.constant 0 : i32
    %c0_i32_1 = arith.constant 0 : i32
    return %c0_i32, %c0_i32_0 : i32, i32
  }
  func.func @transform_11(%arg0: i32, %arg1: i32) -> (i32, i32, i32) {
    %c0_i32 = arith.constant 0 : i32
    %c0_i32_0 = arith.constant 0 : i32
    %c0_i32_1 = arith.constant 0 : i32
    return %arg0, %c0_i32, %c0_i32_0 : i32, i32, i32
  }
}

</mosaic_0001>

<bundles_post_ra>
// kernel: tpu_custom_call.1
= control target key start
LH: loop header
LB: loop body
LE: loop exit
PB: predicated region body
PF: predicated region fallthrough
CT: control target
= control target key end

     0   :  { %16 = vsyncpa [#allocation5], 0  ;;  %s2029_s17 = smov 0   ;;  %s2031_s18 = smov 0   ;;  %s2287_s0 = inlined_call_operand.vmem [shape: bf16[2,8,4], index: 0, kind: input, shape index: {}]   ;;  %s2288_s1 = inlined_call_operand.vmem [shape: f32[2,1,8], index: 1, kind: input, shape index: {}]   ;;  %s2289_s2 = inlined_call_operand.vmem [shape: bf16[4,8], index: 2, kind: input, shape index: {}]   ;;  %s2290_s3 = inlined_call_operand.vmem [shape: f32[1,8], index: 3, kind: input, shape index: {}]   ;;  %s2291_s4 = inlined_call_operand.vmem [shape: bf16[2,4,8,8], index: 4, kind: input, shape index: {}]   ;;  %s2292_s5 = inlined_call_operand.vmem [shape: bf16[2,8,32], index: 5, kind: input, shape index: {}]   ;;  %s2293_s6 = inlined_call_operand.vmem [shape: bf16[2,32,8], index: 6, kind: input, shape index: {}]   ;;  %s2294_s7 = inlined_call_operand.vmem [shape: f32[2,9,8], index: 7, kind: input, shape index: {}]   ;;  %s2295_s8 = inlined_call_operand.vmem [shape: f32[2,1,32], index: 8, kind: input, shape index: {}]   ;;  %s2296_s9 = inlined_call_operand.vmem [shape: bf16[8,128], index: 9, kind: input, shape index: {}]   ;;  %s2297_s10 = inlined_call_operand.vmem [shape: f32[1,128], index: 10, kind: input, shape index: {}]   ;;  %s2298_s11 = inlined_call_operand.hbm [shape: f32[1,2,128], index: 11, kind: output, shape index: {}]  }
   0x1   :  { %s2033_s19 = smov 0  }
   0x2 LB: > { %2300 = sst [smem:[#allocation7_spill]] %s1954_s18  ;;  %s31_s21 = sadd.s32 1, %s1954_s18  ;;  %s1958_s19 = sphi %s2033_s19, %s22_s19   ;;  %s1954_s18 = sphi %s2031_s18, %s2305_s18   ;;  %s1950_s17 = sphi %s2029_s17, %s2304_s17  }
   0x3   : > { %p32_p0 = scmp.ge.s32.totalorder %s31_s21, 2  ;;  %p1664_p1 = scmp.ge.s32.totalorder %s1958_s19, 1 }
   0x4   : > { %p408_p2 = scmp.lt.s32.totalorder %s1958_s19, 3 }
   0x5   : > { %s2307_s21 = smov (%p32_p0, %s31_s21), 0 }
   0x6   : > { %2301 = sst [smem:[#allocation8_spill]] %s2307_s21  ;;  %p409_p3 = pnand %p1664_p1, %p408_p2 }
   0x7   : > { %p480_p4 = scmp.lt.s32.totalorder (!%p409_p3), %s1950_s17, 1  ;;  %p1672_p5 = scmp.ne.s32.totalorder (!%p409_p3), %s1950_s17, 0 }
   0x8   : > { %412 = sbr.rel (%p409_p3) target bundleno = 3414 (0xd56), region = 64 }
   0xf   : > { %s2052_s22 = scalar_select %p480_p4, %s1950_s17, 1 }
  0x10   : > { %506 = sbr.rel (%p1672_p5) target bundleno = 240 (0xf0), region = 68  ;;  %v509_v0 = vld [vmem:[%s2289_s2] sm:$0x3] (!%p1672_p5)  ;;  %vm526_vm0 = vcmask (!%p1672_p5), 1041408   ;;  %v1960_v1 = vmov (!%p1672_p5), 0.0   ;;  %vm1961_vm1 = vmmov (!%p1672_p5), 0  }
  0x11   : > { %s1706_s23 = sshll.u32 %s2052_s22, 4  ;;  %s1667_s24 = sshll.u32 %s2052_s22, 2  ;;  %1742 = vmatprep.subr.bf16.mxu0 (!%p1672_p5), %v1960_v1  ;;  %v528_v2 = vsel (!%p1672_p5), %vm526_vm0, %v509_v0, 0  ;;  %1744 = vmatprep.mubr.msk.bf16.mxu0 (!%p1672_p5), %vm1961_vm1, %v1960_v1  ;;  %v1879_v3 = vld [vmem:[%s2287_s0] sm:$0xff] (!%p1672_p5)   ;;  %vm522_vm2 = vcmask (!%p1672_p5), 31744   ;;  %vm587_vm3 = vcmask (!%p1672_p5), 64512  }
  0x12   : > { %s2059_s27 = scalar_lea.vmem %s2291_s4, %s1706_s23  ;;  %s2064_s30 = scalar_lea.vmem %s2292_s5, %s1667_s24  ;;  %1743 = vmatpush3.bf16.msra.mxu0 (!%p1672_p5), %v528_v2  ;;  %v1673_v4 = vld [vmem:[%s2290_s3] ss:$0 sm:$0xff] (!%p1672_p5)  ;;  %v1677_v10 = vld [vmem:[%s2288_s1 + $0x1] ss:$0 sm:$0xff] (!%p1672_p5) }
  0x13   : > { %s2069_s14 = scalar_lea.vmem %s2293_s6, %s1706_s23  ;;  %s2074_s20 = scalar_lea.vmem %s2294_s7, %s1706_s23  ;;  %v1676_v6 = vld [vmem:[%s2288_s1] ss:$0 sm:$0xff] (!%p1672_p5) }
  0x14   : > { %s501_s25 = scalar_lea.vmem %s2295_s8, %s2052_s22 }
  0x15   : > { %1745 = vmatmul.mubr.msk.bf16.vlgmr.msra.gmra.mrb[0].mxu0 (!%p1672_p5), %vm522_vm2, %v1879_v3 }
  0xe8   : > { %v564_v5 = vpop.f32.mrb[0].mxu0 }
  0xe9   : > { %v565_v7 = vadd.f32 %v1673_v4, %v564_v5  ;;  %v1746_v8 = vpop.f32.mrb[1].mxu0 }
  0xea   : > { %v567_v9 = vpop.f32.mrb[2].mxu0 }
  0xeb   : > { %v585_v11 = vadd.f32 %v1676_v6, %v565_v7  ;;  %v568_v12 = vadd.f32 %v1673_v4, %v567_v9  ;;  %v1747_v13 = vpop.f32.mrb[3].mxu0 }
  0xed   : > { %588 = vst.msk [vmem:[#allocation2] sm:$0xff] %vm587_vm3, %v585_v11  ;;  %v586_v14 = vadd.f32 %v1677_v10, %v568_v12 }
  0xef   : > { %589 = vst.msk [vmem:[#allocation2 + $0x8] sm:$0xff] %vm587_vm3, %v586_v14 }
  0xf0 PF: > { %v1678_v15 = vld [vmem:[%s2059_s27 + $0x4] sm:$0xf]  ;;  %vm611_vm4 = vcmask 1043456   ;;  %v1962_v17 = vmov 0.0   ;;  %vm1963_vm5 = vmmov 0   ;;  %vm607_vm6 = vcmask 64512  }
  0xf1   : > { %1754 = vmatprep.subr.bf16.mxu1 %v1962_v17  ;;  %v661_v18 = vsel %vm611_vm4, %v1678_v15, 0  ;;  %1756 = vmatprep.mubr.msk.bf16.mxu1 %vm1963_vm5, %v1962_v17  ;;  %v593_v20 = vld [vmem:[%s2059_s27] sm:$0xf]  ;;  %v1679_v23 = vld [vmem:[%s2059_s27 + $0x8] sm:$0xf]  ;;  %v603_v25 = vlaneseq  ;;  %vm758_vm7 = vcmask 31744  }
  0xf2   : > { %1755 = vmatpush3.bf16.msra.mxu1 %v661_v18  ;;  %1748 = vmatprep.subr.bf16.mxu0 %v1962_v17  ;;  %v613_v22 = vsel %vm611_vm4, %v593_v20, 0  ;;  %v709_v24 = vsel %vm611_vm4, %v1679_v23, 0  ;;  %v2130_v28 = vld [vmem:[%s2074_s20] sm:$0xff]  ;;  %s1964_s16 = smov 124   ;;  %s1965_s26 = smov 4   ;;  %vm1203_vm8 = vcmask 64544  }
  0xf3   : > { %1749 = vmatpush3.bf16.msra.mxu0 %v613_v22  ;;  %1750 = vmatprep.mubr.msk.bf16.mxu0 %vm1963_vm5, %v1962_v17  ;;  %v2126_v26 = vshrl.u32 %v603_v25, 7  ;;  %vm1379_vm9 = vcmask 261120   ;;  %p1699_p6 = scmp.ne.s32.totalorder %s1950_s17, 1 }
  0xf4   : > { %v2097_v16 = vld [vmem:[#allocation2] sm:$0xff]  ;;  %1760 = vmatprep.subr.bf16.mxu0 %v1962_v17  ;;  %1766 = vmatprep.subr.bf16.mxu1 %v1962_v17  ;;  %vm1967_vm10 = vmmov (!%p1699_p6), 0  }
  0xf5   : > { %v658_v27 = vsub.s32 1, %v2126_v26  ;;  %v605_v30 = vsub.s32 0, %v2126_v26  ;;  %v706_v38 = vsub.s32 2, %v2126_v26 }
  0xf6   : > { %v2103_v19 = vld [vmem:[#allocation2 + $0x8] sm:$0xff] }
  0xf7   : > { %v602_v21 = vpack.c.bf16 %v2103_v19, %v2097_v16  ;;  %v659_v29 = vrot.slane %v2130_v28, %v658_v27  ;;  %v606_v34 = vrot.slane %v2130_v28, %v605_v30  ;;  %v707_v47 = vrot.slane %v2130_v28, %v706_v38 }
  0xf9   : > { %1757 = vmatmul.mubr.msk.bf16.vlgmr.msra.gmra.mrb[0].mxu1 %vm607_vm6, %v602_v21  ;;  %1751 = vmatmul.mubr.msk.bf16.vlgmr.msra.gmra.mrb[0].mxu0 %vm607_vm6, %v602_v21 }
  0xfa   : > { %1768 = vmatprep.mubr.msk.bf16.mxu1 %vm1963_vm5, %v1962_v17  ;;  %1761 = vmatpush3.bf16.msra.mxu0 %v709_v24 }
  0xfb   : > { %1762 = vmatprep.mubr.msk.bf16.mxu0 %vm1963_vm5, %v1962_v17  ;;  %1772 = vmatprep.subr.bf16.mxu0 %v1962_v17 }
 0x101   : > { %1763 = vmatmul.mubr.msk.bf16.vlgmr.msra.gmra.mrb[4].mxu0 %vm607_vm6, %v602_v21 }
 0x102   : > { %1774 = vmatprep.mubr.msk.bf16.mxu0 %vm1963_vm5, %v1962_v17 }
 0x1cc   : > { %v697_v31 = vpop.f32.mrb[0].mxu1  ;;  %v649_v35 = vpop.f32.mrb[0].mxu0 }
 0x1cd   : > { %v698_v32 = vadd.f32 %v697_v31, %v659_v29  ;;  %v1758_v33 = vpop.f32.mrb[1].mxu1  ;;  %v1752_v37 = vpop.f32.mrb[1].mxu0  ;;  %v650_v46 = vadd.f32 %v649_v35, %v606_v34 }
 0x1ce   : > { %v700_v36 = vpop.f32.mrb[2].mxu1  ;;  %v652_v42 = vpop.f32.mrb[2].mxu0 }
 0x1cf   : > { %v754_v39 = vpack.c.bf16 %v698_v32, %v698_v32  ;;  %v701_v40 = vadd.f32 %v700_v36, %v659_v29  ;;  %v1759_v41 = vpop.f32.mrb[3].mxu1  ;;  %v1753_v43 = vpop.f32.mrb[3].mxu0  ;;  %v752_v49 = vpack.c.bf16 %v650_v46, %v650_v46  ;;  %v653_v50 = vadd.f32 %v652_v42, %v606_v34 }
 0x1d1   : > { %v763_v44 = vsel %vm758_vm7, %v754_v39, 0  ;;  %v755_v45 = vpack.c.bf16 %v701_v40, %v701_v40  ;;  %v753_v58 = vpack.c.bf16 %v653_v50, %v653_v50 }
 0x1d2   : > { %1767 = vmatpush3.bf16.xpose.msra.mxu1 %v763_v44 }
 0x1d3   : > { %v809_v48 = vsel %vm758_vm7, %v755_v45, 0  ;;  %1025 = vrot.lane.b32.xlu1 %v755_v45, %s1964_s16  ;;  %1778 = vmatprep.subr.bf16.mxu1 %v1962_v17 }
 0x1d4   : > { %1773 = vmatpush3.bf16.xpose.msra.mxu0 %v809_v48  ;;  %v745_v51 = vpop.f32.mrb[4].mxu0 }
 0x1d5   : > { %1784 = vmatprep.subr.bf16.mxu0 %v1962_v17  ;;  %v746_v52 = vadd.f32 %v745_v51, %v707_v47  ;;  %v1764_v53 = vpop.f32.mrb[5].mxu0 }
 0x1d6   : > { %v748_v54 = vpop.f32.mrb[6].mxu0 }
 0x1d7   : > { %v2142_v55 = vpack.c.bf16 %v746_v52, %v746_v52  ;;  %v749_v56 = vadd.f32 %v748_v54, %v707_v47  ;;  %v1765_v57 = vpop.f32.mrb[7].mxu0 }
 0x1d9   : > { %1769 = vmatmul.mubr.msk.bf16.vlgmr.msra.gmra.mrb[4].mxu1 %vm758_vm7, %v752_v49  ;;  %v879_v59 = vsel %vm611_vm4, %v2142_v55, 0  ;;  %v2147_v60 = vpack.c.bf16 %v749_v56, %v749_v56 }
 0x1da   : > { %1780 = vmatprep.mubr.msk.bf16.mxu1 %vm1963_vm5, %v1962_v17  ;;  %1779 = vmatpush3.bf16.msra.mxu1 %v879_v59 }
 0x1db   : > { %1775 = vmatmul.mubr.msk.bf16.vlgmr.msra.gmra.mrb[8].mxu0 %vm758_vm7, %v753_v58  ;;  %v925_v61 = vsel %vm611_vm4, %v2147_v60, 0  ;;  %1790 = vmatprep.subr.bf16.mxu1 %v1962_v17 }
 0x1dc   : > { %1786 = vmatprep.mubr.msk.bf16.mxu0 %vm1963_vm5, %v1962_v17  ;;  %1785 = vmatpush3.bf16.msra.mxu0 %v925_v61 }
 0x1dd   : > { %1796 = vmatprep.subr.bf16.mxu0 %v1962_v17 }
 0x245   : > { %v1026_v21 = vpop.permute.xlu1 %1025 }
 0x246   : > { %v1031_v34 = vsel %vm758_vm7, %v1026_v21, 0 }
 0x2ac   : > { %v799_v62 = vpop.f32.mrb[4].mxu1 }
 0x2ad   : > { %v1770_v63 = vpop.f32.mrb[5].mxu1  ;;  %v851_v0 = vsel %vm607_vm6, %v799_v62, -inf }
 0x2ae   : > { %v845_v1 = vpop.f32.mrb[8].mxu0  ;;  %852 = vmax.xlane.f32.xlu0 %v851_v0  ;;  %v802_v2 = vpop.f32.mrb[6].mxu1 }
 0x2af   : > { %v1771_v3 = vpop.f32.mrb[7].mxu1  ;;  %v1776_v4 = vpop.f32.mrb[9].mxu0  ;;  %v854_v7 = vsel %vm607_vm6, %v845_v1, -inf }
 0x2b0   : > { %v848_v5 = vpop.f32.mrb[10].mxu0 }
 0x2b1   : > { %v1777_v6 = vpop.f32.mrb[11].mxu0 }
 0x2b2   : > { %855 = vmax.xlane.f32.xlu0 %v854_v7 }
 0x2c8   : > { %973 = vrot.lane.b32.xlu0 %v754_v39, %s1964_s16 }
 0x33b   : > { %v853_v8 = vpop.xlane.xlu0 %852 }
 0x33c   : > { %v857_v9 = vsub.f32 %v799_v62, %v853_v8 }
 0x33e   : > { %v859_v10 = vmul.f32 1.442695, %v857_v9 }
 0x33f   : > { %v856_v11 = vpop.xlane.xlu0 %855 }
 0x340   : > { %1882 = vpow2.f32 %v859_v10  ;;  %v858_v12 = vsub.f32 %v845_v1, %v856_v11 }
 0x342   : > { %v861_v13 = vmul.f32 1.442695, %v858_v12 }
 0x343   : > { %v974_v27 = vpop.permute.xlu0 %973 }
 0x344   : > { %1884 = vpow2.f32 %v861_v13  ;;  %v979_v31 = vsel %vm758_vm7, %v974_v27, 0  ;;  %v1680_v13 = vld [vmem:[%s2059_s27 + $0xc] sm:$0xf] }
 0x34a   : > { %v1883_v14 = vpop.eup %1882 }
 0x34b   : > { %v863_v15 = vsel %vm607_vm6, %v1883_v14, 0.0 }
 0x34c   : > { %864 = vadd.xlane.f32.xlu1 %v863_v15 }
 0x34e   : > { %v1885_v18 = vpop.eup %1884 }
 0x34f   : > { %v866_v20 = vsel %vm607_vm6, %v1885_v18, 0.0 }
 0x350   : > { %867 = vadd.xlane.f32.xlu1 %v866_v20 }
 0x361   : > { %970 = vrot.lane.b32.xlu1 %v752_v49, %s1964_s16 }
 0x365   : > { %1022 = vrot.lane.b32.xlu1 %v753_v58, %s1964_s16 }
 0x3d9   : > { %v865_v22 = vpop.xlane.xlu1 %864 }
 0x3da   : > { %1886 = vrcp.f32 %v865_v22 }
 0x3dd   : > { %v868_v23 = vpop.xlane.xlu1 %867 }
 0x3de   : > { %1888 = vrcp.f32 %v868_v23 }
 0x3e1   : > { %v971_v35 = vpop.permute.xlu1 %970 }
 0x3e4   : > { %v1887_v24 = vpop.eup %1886 }
 0x3e5   : > { %v871_v25 = vmul.f32 %v1887_v24, %v1883_v14  ;;  %v1023_v36 = vpop.permute.xlu1 %1022  ;;  %v1217_v14 = vsel %vm611_vm4, %v1680_v13, 0 }
 0x3e7   : > { %v873_v29 = vpack.c.bf16 %v871_v25, %v871_v25 }
 0x3e8   : > { %v1889_v30 = vpop.eup %1888 }
 0x3e9   : > { %v872_v32 = vmul.f32 %v1889_v30, %v1885_v18  ;;  %1781 = vmatmul.mubr.msk.bf16.vlgmr.msra.gmra.mrb[8].mxu1 %vm607_vm6, %v873_v29 }
 0x3ea   : > { %1791 = vmatpush3.bf16.xpose.msra.mxu1 %v979_v31  ;;  %1792 = vmatprep.mubr.msk.bf16.mxu1 %vm1963_vm5, %v1962_v17 }
 0x3eb   : > { %v874_v33 = vpack.c.bf16 %v872_v32, %v872_v32  ;;  %1802 = vmatprep.subr.bf16.mxu1 %v1962_v17 }
 0x3ed   : > { %1787 = vmatmul.mubr.msk.bf16.vlgmr.msra.gmra.mrb[12].mxu0 %vm607_vm6, %v874_v33  ;;  %v1211_v33 = vsub.s32 3, %v2126_v26 }
 0x3ee   : > { %1797 = vmatpush3.bf16.xpose.msra.mxu0 %v1031_v34  ;;  %1798 = vmatprep.mubr.msk.bf16.mxu0 %vm1963_vm5, %v1962_v17 }
 0x3ef   : > { %1808 = vmatprep.subr.bf16.mxu0 %v1962_v17  ;;  %v1212_v34 = vrot.slane %v2130_v28, %v1211_v33 }
 0x3f1   : > { %1793 = vmatmul.mubr.msk.bf16.vlgmr.msra.gmra.mrb[12].mxu1 %vm758_vm7, %v971_v35 }
 0x3f2   : > { %1804 = vmatprep.mubr.msk.bf16.mxu1 %vm1963_vm5, %v1962_v17 }
 0x3f5   : > { %1799 = vmatmul.mubr.msk.bf16.vlgmr.msra.gmra.mrb[16].mxu0 %vm758_vm7, %v1023_v36 }
 0x3f6   : > { %1810 = vmatprep.mubr.msk.bf16.mxu0 %vm1963_vm5, %v1962_v17 }
 0x4bc   : > { %v915_v37 = vpop.f32.mrb[8].mxu1 }
 0x4bd   : > { %967 = vst.msk [vmem:[#allocation3] sm:$0xff] %vm758_vm7, %v915_v37  ;;  %v1782_v38 = vpop.f32.mrb[9].mxu1 }
 0x4be   : > { %v918_v39 = vpop.f32.mrb[10].mxu1 }
 0x4bf   : > { %v1783_v40 = vpop.f32.mrb[11].mxu1 }
 0x4c0   : > { %v961_v41 = vpop.f32.mrb[12].mxu0 }
 0x4c1   : > { %968 = vst.msk [vmem:[#allocation3 + $0x8] sm:$0xff] %vm758_vm7, %v961_v41  ;;  %v1788_v42 = vpop.f32.mrb[13].mxu0 }
 0x4c2   : > { %v964_v43 = vpop.f32.mrb[14].mxu0 }
 0x4c3   : > { %v1789_v44 = vpop.f32.mrb[15].mxu0 }
 0x4c4   : > { %v1015_v45 = vpop.f32.mrb[12].mxu1 }
 0x4c5   : > { %v1794_v46 = vpop.f32.mrb[13].mxu1  ;;  %v1073_v47 = vsel %vm607_vm6, %v1015_v45, -inf }
 0x4c6   : > { %1074 = vmax.xlane.f32.xlu0 %v1073_v47  ;;  %v1018_v48 = vpop.f32.mrb[14].mxu1 }
 0x4c7   : > { %v1795_v49 = vpop.f32.mrb[15].mxu1 }
 0x4c8   : > { %v1067_v50 = vpop.f32.mrb[16].mxu0 }
 0x4c9   : > { %v1800_v51 = vpop.f32.mrb[17].mxu0  ;;  %v1076_v52 = vsel %vm607_vm6, %v1067_v50, -inf }
 0x4ca   : > { %1077 = vmax.xlane.f32.xlu1 %v1076_v52  ;;  %v1070_v53 = vpop.f32.mrb[18].mxu0 }
 0x4cb   : > { %v1801_v54 = vpop.f32.mrb[19].mxu0 }
 0x4db   : > { %1147 = vrot.lane.b32.xlu1 %v2147_v60, %s1964_s16 }
 0x553   : > { %v1075_v56 = vpop.xlane.xlu0 %1074 }
 0x554   : > { %v1079_v57 = vsub.f32 %v1015_v45, %v1075_v56 }
 0x556   : > { %v1081_v58 = vmul.f32 1.442695, %v1079_v57 }
 0x557   : > { %v1078_v59 = vpop.xlane.xlu1 %1077 }
 0x558   : > { %1890 = vpow2.f32 %v1081_v58  ;;  %v1080_v61 = vsub.f32 %v1067_v50, %v1078_v59 }
 0x55a   : > { %v1083_v62 = vmul.f32 1.442695, %v1080_v61 }
 0x55b   : > { %v1148_v63 = vpop.permute.xlu1 %1147 }
 0x55c   : > { %1892 = vpow2.f32 %v1083_v62  ;;  %v1153_v0 = vsel %vm611_vm4, %v1148_v63, 0  ;;  %v1291_v63 = vsub.s32 5, %v2126_v26 }
 0x55d   : > { %1809 = vmatpush3.bf16.msra.mxu0 %v1153_v0 }
 0x55e   : > { %1820 = vmatprep.subr.bf16.mxu0 %v1962_v17 }
 0x562   : > { %v1891_v1 = vpop.eup %1890 }
 0x563   : > { %v1085_v2 = vsel %vm607_vm6, %v1891_v1, 0.0 }
 0x564   : > { %1086 = vadd.xlane.f32.xlu0 %v1085_v2 }
 0x566   : > { %v1893_v3 = vpop.eup %1892 }
 0x567   : > { %v1088_v60 = vsel %vm607_vm6, %v1893_v3, 0.0 }
 0x568   : > { %1089 = vadd.xlane.f32.xlu0 %v1088_v60 }
 0x57e   : > { %1098 = vrot.lane.b32.xlu0 %v2142_v55, %s1964_s16 }
 0x5f1   : > { %v1087_v4 = vpop.xlane.xlu0 %1086 }
 0x5f2   : > { %1894 = vrcp.f32 %v1087_v4 }
 0x5f5   : > { %v1090_v5 = vpop.xlane.xlu0 %1089 }
 0x5f6   : > { %1896 = vrcp.f32 %v1090_v5 }
 0x5f9   : > { %v1099_v6 = vpop.permute.xlu0 %1098 }
 0x5fa   : > { %v1104_v7 = vsel %vm611_vm4, %v1099_v6, 0 }
 0x5fb   : > { %1803 = vmatpush3.bf16.msra.mxu1 %v1104_v7 }
 0x5fc   : > { %v1895_v8 = vpop.eup %1894  ;;  %1814 = vmatprep.subr.bf16.mxu1 %v1962_v17 }
 0x5fd   : > { %v1093_v9 = vmul.f32 %v1895_v8, %v1891_v1  ;;  %v1292_v1 = vrot.slane %v2130_v28, %v1291_v63 }
 0x5ff   : > { %v1095_v10 = vpack.c.bf16 %v1093_v9, %v1093_v9 }
 0x600   : > { %v1897_v11 = vpop.eup %1896 }
 0x601   : > { %v1094_v12 = vmul.f32 %v1897_v11, %v1893_v3  ;;  %1805 = vmatmul.mubr.msk.bf16.vlgmr.msra.gmra.mrb[16].mxu1 %vm607_vm6, %v1095_v10  ;;  %v1297_v3 = vsub.s32 6, %v2126_v26  ;;  %v1880_v11 = vld [vmem:[%s2069_s14] sm:$0xff]  }
 0x602   : > { %1816 = vmatprep.mubr.msk.bf16.mxu1 %vm1963_vm5, %v1962_v17  ;;  %1815 = vmatpush3.bf16.msra.mxu1 %v1217_v14 }
 0x603   : > { %v1096_v55 = vpack.c.bf16 %v1094_v12, %v1094_v12  ;;  %1826 = vmatprep.subr.bf16.mxu1 %v1962_v17  ;;  %v1298_v6 = vrot.slane %v2130_v28, %v1297_v3  ;;  %v1881_v12 = vld [vmem:[%s2069_s14 + $0x8] sm:$0xff]  }
 0x605   : > { %1811 = vmatmul.mubr.msk.bf16.vlgmr.msra.gmra.mrb[20].mxu0 %vm607_vm6, %v1096_v55  ;;  %v1693_v55 = vld [vmem:[%s501_s25] ss:$0 sm:$0xff] }
 0x606   : > { %1822 = vmatprep.mubr.msk.bf16.mxu0 %vm1963_vm5, %v1962_v17 }
 0x6d4   : > { %v1140_v15 = vpop.f32.mrb[16].mxu1 }
 0x6d5   : > { %1197 = vrot.lane.b32.xlu1 %v1140_v15, %s1965_s26  ;;  %v1806_v18 = vpop.f32.mrb[17].mxu1 }
 0x6d6   : > { %v1143_v20 = vpop.f32.mrb[18].mxu1 }
 0x6d7   : > { %v1807_v21 = vpop.f32.mrb[19].mxu1 }
 0x6d8   : > { %v1189_v22 = vpop.f32.mrb[20].mxu0 }
 0x6d9   : > { %v1812_v23 = vpop.f32.mrb[21].mxu0  ;;  %1199 = vrot.lane.b32.xlu1 %v1189_v22, %s1965_s26 }
 0x6da   : > { %v1192_v24 = vpop.f32.mrb[22].mxu0 }
 0x6db   : > { %v1813_v25 = vpop.f32.mrb[23].mxu0 }
 0x747   : > { %v1198_v27 = vpop.permute.xlu1 %1197 }
 0x748   : > { %1204 = vst.msk [vmem:[#allocation3] sm:$0xff] %vm1203_vm8, %v1198_v27 }
 0x74b   : > { %v1200_v29 = vpop.permute.xlu1 %1199 }
 0x74c   : > { %1205 = vst.msk [vmem:[#allocation3 + $0x8] sm:$0xff] %vm1203_vm8, %v1200_v29 }
 0x74f   : > { %v1206_v30 = vld [vmem:[#allocation3] sm:$0xff] }
 0x753   : > { %v1207_v31 = vld [vmem:[#allocation3 + $0x8] sm:$0xff] }
 0x754   : > { %v1208_v32 = vpack.c.bf16 %v1207_v31, %v1206_v30 }
 0x756   : > { %1817 = vmatmul.mubr.msk.bf16.vlgmr.msra.gmra.mrb[20].mxu1 %vm607_vm6, %v1208_v32 }
 0x757   : > { %1830 = vmatprep.mubr.msk.bf16.mxu1 %vm1963_vm5, %v1962_v17  ;;  %1827 = vmatpush3.bf16.msra.mxu1 %v1880_v11 }
 0x758   : > { %1828 = vmatprep.subr.bf16.mxu1 %v1962_v17  ;;  %v1365_v17 = vsub.s32 4, %v2126_v26 }
 0x75a   : > { %v1366_v25 = vrot.slane %v2130_v28, %v1365_v17 }
 0x75b   : > { %1829 = vmatpush3.bf16.msra.mxu1 %v1881_v12 }
 0x829   : > { %v1253_v35 = vpop.f32.mrb[20].mxu1 }
 0x82a   : > { %v1254_v36 = vadd.f32 %v1253_v35, %v1212_v34  ;;  %v1818_v37 = vpop.f32.mrb[21].mxu1 }
 0x82b   : > { %v1256_v38 = vpop.f32.mrb[22].mxu1 }
 0x82c   : > { %v1257_v39 = vadd.f32 %v1256_v38, %v1212_v34  ;;  %v1819_v40 = vpop.f32.mrb[23].mxu1  ;;  %v1260_v41 = vadd.f32 %v1254_v36, %v2097_v16 }
 0x82e   : > { %v1262_v42 = vsel %vm607_vm6, %v1260_v41, 0.0  ;;  %v1261_v43 = vadd.f32 %v1257_v39, %v2103_v19  ;;  %v1302_v19 = vld [vmem:[%s2064_s30] sm:$0xf] }
 0x82f   : > { %1263 = vadd.xlane.f32.xlu0 %v1262_v42  ;;  %v1313_v54 = vsel %vm611_vm4, %v1302_v19, 0 }
 0x830   : > { %v1265_v44 = vsel %vm607_vm6, %v1261_v43, 0.0  ;;  %1821 = vmatpush3.bf16.msra.mxu0 %v1313_v54 }
 0x831   : > { %1266 = vadd.xlane.f32.xlu1 %v1265_v44 }
 0x8bc   : > { %v1264_v45 = vpop.xlane.xlu0 %1263 }
 0x8bd   : > { %v1269_v46 = vmul.f32 0.125, %v1264_v45 }
 0x8be   : > { %v1267_v47 = vpop.xlane.xlu1 %1266 }
 0x8bf   : > { %v1271_v48 = vsub.f32 %v1260_v41, %v1269_v46  ;;  %v1270_v49 = vmul.f32 0.125, %v1267_v47 }
 0x8c1   : > { %v1272_v50 = vsub.f32 %v1261_v43, %v1270_v49  ;;  %v1273_v51 = vmul.f32 %v1271_v48, %v1271_v48 }
 0x8c3   : > { %v1275_v52 = vsel %vm607_vm6, %v1273_v51, 0.0  ;;  %v1274_v53 = vmul.f32 %v1272_v50, %v1272_v50 }
 0x8c4   : > { %1276 = vadd.xlane.f32.xlu0 %v1275_v52 }
 0x8c5   : > { %v1278_v16 = vsel %vm607_vm6, %v1274_v53, 0.0 }
 0x8c8   : > { %1279 = vadd.xlane.f32.xlu0 %v1278_v16  ;;  %v1454_v16 = vsub.s32 7, %v2126_v26  ;;  %v1473_v26 = vld [vmem:[%s2296_s9] sm:$0xf] (!%p1699_p6) }
 0x8ca   : > { %v1455_v19 = vrot.slane %v2130_v28, %v1454_v16  ;;  %v1966_v28 = vmov (!%p1699_p6), 0.0  }
 0x8cb   : > { %1834 = vmatprep.subr.bf16.mxu0 (!%p1699_p6), %v1966_v28 }
 0x951   : > { %v1277_v56 = vpop.xlane.xlu0 %1276 }
 0x952   : > { %v1281_v57 = vmul.f32 0.125, %v1277_v56 }
 0x954   : > { %v1283_v58 = vadd.f32 1e-05, %v1281_v57 }
 0x955   : > { %v1280_v59 = vpop.xlane.xlu0 %1279 }
 0x956   : > { %1898 = vrsqrt.f32 %v1283_v58  ;;  %v1282_v61 = vmul.f32 0.125, %v1280_v59  ;;  %v1698_v58 = vld [vmem:[%s2074_s20 + $0x8] ss:$0 sm:$0xff] }
 0x958   : > { %v1284_v62 = vadd.f32 1e-05, %v1282_v61 }
 0x95a   : > { %1900 = vrsqrt.f32 %v1284_v62 }
 0x960   : > { %v1899_v0 = vpop.eup %1898 }
 0x961   : > { %v1287_v2 = vmul.f32 %v1899_v0, %v1271_v48 }
 0x963   : > { %v1293_v4 = vmul.f32 %v1292_v1, %v1287_v2 }
 0x964   : > { %v1901_v60 = vpop.eup %1900 }
 0x965   : > { %v1288_v5 = vmul.f32 %v1901_v60, %v1272_v50  ;;  %v1299_v8 = vadd.f32 %v1298_v6, %v1293_v4  ;;  %v1700_v60 = vld [vmem:[%s2297_s10] ss:$0 sm:$0xff] (!%p1699_p6) }
 0x967   : > { %v1294_v7 = vmul.f32 %v1292_v1, %v1288_v5  ;;  %v1485_v1 = vsel (!%p1699_p6), %vm611_vm4, %v1473_v26, 0 }
 0x969   : > { %v1300_v9 = vadd.f32 %v1298_v6, %v1294_v7 }
 0x96b   : > { %v1301_v10 = vpack.c.bf16 %v1300_v9, %v1299_v8 }
 0x96d   : > { %1823 = vmatmul.mubr.msk.bf16.vlgmr.msra.gmra.mrb[24].mxu0 %vm607_vm6, %v1301_v10 }
 0x96e   : > { %1836 = vmatprep.mubr.msk.bf16.mxu0 (!%p1699_p6), %vm1967_vm10, %v1966_v28  ;;  %1835 = vmatpush3.bf16.msra.mxu0 (!%p1699_p6), %v1485_v1 }
 0xa40   : > { %v1349_v13 = vpop.f32.mrb[24].mxu0 }
 0xa41   : > { %v1350_v14 = vadd.f32 %v1693_v55, %v1349_v13  ;;  %v1824_v15 = vpop.f32.mrb[25].mxu0 }
 0xa42   : > { %v1352_v18 = vpop.f32.mrb[26].mxu0 }
 0xa43   : > { %v1353_v20 = vadd.f32 %v1693_v55, %v1352_v18  ;;  %v1825_v21 = vpop.f32.mrb[27].mxu0  ;;  %v1356_v22 = vmax.f32 %v1350_v14, 0.0 }
 0xa45   : > { %v1357_v23 = vmax.f32 %v1353_v20, 0.0 }
 0xa47   : > { %v1358_v24 = vpack.c.bf16 %v1357_v23, %v1356_v22 }
 0xa49   : > { %1831 = vmatmul.mubr.msk.bf16.vlgmr.msra.gmra.mrb[24].mxu1 %vm1379_vm9, %v1358_v24 }
 0xb1c   : > { %v1417_v27 = vpop.f32.mrb[24].mxu1 }
 0xb1d   : > { %v1418_v29 = vadd.f32 %v1417_v27, %v1366_v25  ;;  %v1832_v30 = vpop.f32.mrb[25].mxu1 }
 0xb1e   : > { %v1420_v31 = vpop.f32.mrb[26].mxu1 }
 0xb1f   : > { %v1421_v32 = vadd.f32 %v1420_v31, %v1366_v25  ;;  %v1833_v33 = vpop.f32.mrb[27].mxu1  ;;  %v1424_v34 = vadd.f32 %v1418_v29, %v1299_v8 }
 0xb21   : > { %v1426_v35 = vsel %vm607_vm6, %v1424_v34, 0.0  ;;  %v1425_v36 = vadd.f32 %v1421_v32, %v1300_v9 }
 0xb22   : > { %1427 = vadd.xlane.f32.xlu0 %v1426_v35 }
 0xb23   : > { %v1429_v37 = vsel %vm607_vm6, %v1425_v36, 0.0 }
 0xb24   : > { %1430 = vadd.xlane.f32.xlu1 %v1429_v37 }
 0xbaf   : > { %v1428_v38 = vpop.xlane.xlu0 %1427 }
 0xbb0   : > { %v1432_v39 = vmul.f32 0.125, %v1428_v38 }
 0xbb1   : > { %v1431_v40 = vpop.xlane.xlu1 %1430 }
 0xbb2   : > { %v1434_v41 = vsub.f32 %v1424_v34, %v1432_v39  ;;  %v1433_v42 = vmul.f32 0.125, %v1431_v40 }
 0xbb4   : > { %v1435_v43 = vsub.f32 %v1425_v36, %v1433_v42  ;;  %v1436_v44 = vmul.f32 %v1434_v41, %v1434_v41 }
 0xbb6   : > { %v1438_v45 = vsel %vm607_vm6, %v1436_v44, 0.0  ;;  %v1437_v46 = vmul.f32 %v1435_v43, %v1435_v43 }
 0xbb7   : > { %1439 = vadd.xlane.f32.xlu0 %v1438_v45 }
 0xbb8   : > { %v1441_v47 = vsel %vm607_vm6, %v1437_v46, 0.0 }
 0xbb9   : > { %1442 = vadd.xlane.f32.xlu1 %v1441_v47 }
 0xc44   : > { %v1440_v48 = vpop.xlane.xlu0 %1439 }
 0xc45   : > { %v1444_v49 = vmul.f32 0.125, %v1440_v48 }
 0xc46   : > { %v1443_v50 = vpop.xlane.xlu1 %1442 }
 0xc47   : > { %v1446_v51 = vadd.f32 1e-05, %v1444_v49  ;;  %v1445_v52 = vmul.f32 0.125, %v1443_v50 }
 0xc49   : > { %1902 = vrsqrt.f32 %v1446_v51  ;;  %v1447_v53 = vadd.f32 1e-05, %v1445_v52 }
 0xc4b   : > { %1904 = vrsqrt.f32 %v1447_v53 }
 0xc53   : > { %v1903_v54 = vpop.eup %1902 }
 0xc54   : > { %v1450_v56 = vmul.f32 %v1903_v54, %v1434_v41 }
 0xc55   : > { %v1905_v57 = vpop.eup %1904 }
 0xc56   : > { %v1456_v59 = vmul.f32 %v1455_v19, %v1450_v56  ;;  %v1451_v61 = vmul.f32 %v1905_v57, %v1435_v43  ;;  %1469 = sbr.rel (%p1699_p6) target bundleno = 3389 (0xd3d), region = 72 }
 0xc58   : > { %v1462_v62 = vadd.f32 %v1698_v58, %v1456_v59  ;;  %v1457_v63 = vmul.f32 %v1455_v19, %v1451_v61 }
 0xc5a   : > { %1464 = vst.msk [vmem:[#allocation2] sm:$0xff] %vm607_vm6, %v1462_v62  ;;  %v1463_v0 = vadd.f32 %v1698_v58, %v1457_v63 }
 0xc5c   : > { %1465 = vst.msk [vmem:[#allocation2 + $0x8] sm:$0xff] %vm607_vm6, %v1463_v0 }
 0xc63   : > { %v1471_v2 = vld [vmem:[#allocation2 + $0x7] ss:$8 sm:$0x3] }
 0xc64   : > { %v1472_v3 = vpack.c.bf16 %v1471_v2, %v1471_v2 }
 0xc66   : > { %1837 = vmatmul.mubr.msk.bf16.vlgmr.msra.gmra.mrb[0].mxu0 %vm607_vm6, %v1472_v3 }
 0xd39   : > { %v1521_v4 = vpop.f32.mrb[0].mxu0 }
 0xd3a   : > { %v1522_v5 = vadd.f32 %v1700_v60, %v1521_v4  ;;  %v1838_v6 = vpop.f32.mrb[1].mxu0 }
 0xd3b   : > { %v1524_v7 = vpop.f32.mrb[2].mxu0 }
 0xd3c   : > { %1527 = vst [vmem:[#allocation4] sm:$0x3] %v1522_v5  ;;  %v1839_v8 = vpop.f32.mrb[3].mxu0 }
 0xd3d PF: > { %s2302_s17 = sadd.s32 4294967295, %s1958_s19   ;;  %s1968_s28 = smov [#allocation4]  }
 0xd3e   : > { %p2252_p7 = scmp.eq.s32.totalorder %s2302_s17, 1  ;;  %s1537_s23 = sshll.u32 %s1968_s28, 4  ;;  %s1538_s23 = int_to_ptr.vmem [resolvable:$true] %s1537_s23 }
 0xd3f   : > { %s1906_s18 = scalar_lea.vmem %s1538_s23, 32  ;;  %p1913_p11 = scmp.lt.s32.totalorder %s1538_s23, %s1538_s23 }
 0xd40   : > { %p1907_p8 = scmp.ne.s32.totalorder %s1538_s23, %s1906_s18  ;;  %p1914_p12 = scmp.lt.s32.totalorder %s1906_s18, %s1906_s18 }
 0xd42   : > { %p1908_p9 = pnand %p1907_p8, %p2252_p7  ;;  %p1915_p13 = por %p1914_p12, %p1913_p11 }
 0xd44   : > { %p1909_p10 = pneg %p1908_p9 }
 0xd46   : > { %p1916_p0 = pnand %p1915_p13, %p1909_p10 }
 0xd48   : > { %1919 = shalt.err (!%p1916_p0)
}
 0xd49   : > { %s1920_s12 = scalar_lea.hbm %s2298_s11, 32 }
 0xd4a   : > { %p1921_p1 = scmp.ne.s32.totalorder %s2298_s11, %s1920_s12  ;;  %p1926_p4 = scmp.lt.u32.totalorder %s1920_s12, %s2298_s11 }
 0xd4c   : > { %p1922_p2 = pnand %p1921_p1, %p2252_p7 }
 0xd4e   : > { %p1923_p3 = pneg %p1922_p2 }
 0xd50   : > { %p1928_p5 = pnand %p1926_p4, %p1923_p3 }
 0xd52   : > { %1931 = shalt.err (!%p1928_p5)
}
 0xd53   : > { %1841 = dma.vmem_to_hbm [thread:$0]  (%p2252_p7), %s1538_s23, 32, %s2298_s11, [#allocation5]  }
 0xd54   : > { %1945 = dma.done.wait (%p2252_p7), [#allocation5], 32  }
 0xd55   : > { %1947 = vsyncadd (%p2252_p7), [#allocation5], 4294967264 }
 0xd56 PF: > { %s22_s19 = sadd.s32 1, %s1958_s19   ;;  %s2304_s17 = sld [smem:[#allocation7_spill]] }
 0xd57   : > { %p19_p6 = scmp.ge.s32.totalorder %s22_s19, 4   ;;  %s2305_s18 = sld [smem:[#allocation8_spill]] }
 0xd59   :  { %21 = sbr.rel (!%p19_p6) target bundleno = 2 (0x2), region = 122 }
 0xd60   :  { %1550 = vsyncpa [#allocation5], 1 }
 0xd61   :  { %1552 = vsyncpa [#allocation5 + $0x1], 1 }

</bundles_post_ra>
